<compile_context>
chip_gen: v5e
topology: v5e:2x2
jax: 0.10.0
libtpu: 0.0.40
codegen_flags: <defaults>
</compile_context>

<pallas_src>
import functools

import jax
import jax.numpy as jnp
from jax import lax
from jax.experimental import pallas as pl
from jax.experimental.pallas import tpu as pltpu


_NEG_BIG = -1e30  # bias value for padded class columns: never wins max, exp -> 0


def _round_up(x, m):
    return ((x + m - 1) // m) * m


def _default_tile_n(n, d):
    # Keep the double-buffered bf16 activation stream around ~2 MiB of VMEM.
    cap = max(16, ((2 * 1024 * 1024) // max(2 * d, 1)) // 16 * 16)
    return int(min(512, cap, _round_up(max(n, 16), 16)))


def _masked_ce_kernel(x_ref, w_ref, b_ref, lab_ref,
                      loss_ref, cnt_ref,
                      m_ref, l_ref, p_ref, *, tile_c):
    c = pl.program_id(1)

    @pl.when(c == 0)
    def _():
        m_ref[...] = jnp.full_like(m_ref, -jnp.inf)   # running row max
        l_ref[...] = jnp.zeros_like(l_ref)            # running rescaled exp-sum
        p_ref[...] = jnp.zeros_like(p_ref)            # picked (target) logit

    # bf16 MXU matmul with f32 accumulation.  Padded class columns have zero
    # weights and a -1e30 bias, so they never win the max nor feed the exp-sum.
    logits = jnp.dot(x_ref[...], w_ref[...],
                     preferred_element_type=jnp.float32) + b_ref[...]

    labels = lab_ref[...]                             # (tile_n, 1) i32, -1 = masked

    # Online (streaming) log-sum-exp across class tiles.
    m_old = m_ref[...]
    m_new = jnp.maximum(m_old, jnp.max(logits, axis=-1, keepdims=True))
    alpha = jnp.exp(m_old - m_new)
    l_ref[...] = alpha * l_ref[...] + jnp.sum(jnp.exp(logits - m_new),
                                              axis=-1, keepdims=True)
    m_ref[...] = m_new

    # Gather the target-class logit with a lane-iota compare (no dynamic gather).
    col = lax.broadcasted_iota(jnp.int32, logits.shape, 1)
    hit = col == (labels - c * tile_c)                # label -1 never matches
    p_ref[...] += jnp.sum(jnp.where(hit, logits, 0.0), axis=-1, keepdims=True)

    @pl.when(c == pl.num_programs(1) - 1)
    def _():
        valid = labels != -1
        lse = m_ref[...] + jnp.log(l_ref[...])
        loss_ref[...] = jnp.where(valid, lse - p_ref[...], 0.0)
        cnt_ref[...] = valid.astype(jnp.float32)


def masked_cross_entropy_padded(inputs, labels_padded, w_padded, b_padded,
                                *, tile_n, tile_c):
    """inputs: (N, D) float; labels_padded: (Np, 1) i32 (-1 = masked/pad rows);
    w_padded: (D, Cp) bf16 (pre-transposed); b_padded: (1, Cp) f32 with -1e30
    in the padded class columns."""
    N, D = inputs.shape
    Cp = w_padded.shape[1]
    Np = labels_padded.shape[0]
    n_row_tiles = Np // tile_n
    n_cls_tiles = Cp // tile_c

    x = inputs.astype(jnp.bfloat16)
    kernel = functools.partial(_masked_ce_kernel, tile_c=tile_c)

    cost = pl.CostEstimate(
        flops=int(2 * Np * D * Cp),
        transcendentals=int(Np * Cp + Np),
        bytes_accessed=int(Np * D * 2 + n_row_tiles * D * Cp * 2
                           + n_row_tiles * Cp * 4 + Np * 4 + 2 * Np * 4),
    )

    loss_rows, valid_rows = pl.pallas_call(
        kernel,
        out_shape=(jax.ShapeDtypeStruct((Np, 1), jnp.float32),
                   jax.ShapeDtypeStruct((Np, 1), jnp.float32)),
        grid_spec=pltpu.PrefetchScalarGridSpec(
            num_scalar_prefetch=0,
            grid=(n_row_tiles, n_cls_tiles),          # class (reduction) axis last
            in_specs=[
                pl.BlockSpec((tile_n, D), lambda r, c: (r, 0)),    # activations
                pl.BlockSpec((D, tile_c), lambda r, c: (0, c)),    # weight tile
                pl.BlockSpec((1, tile_c), lambda r, c: (0, c)),    # bias tile
                pl.BlockSpec((tile_n, 1), lambda r, c: (r, 0)),    # labels
            ],
            out_specs=[
                pl.BlockSpec((tile_n, 1), lambda r, c: (r, 0)),    # per-row loss
                pl.BlockSpec((tile_n, 1), lambda r, c: (r, 0)),    # per-row valid
            ],
            scratch_shapes=[pltpu.VMEM((tile_n, 1), jnp.float32)] * 3,
        ),
        compiler_params=pltpu.CompilerParams(
            dimension_semantics=("parallel", "arbitrary")),
        cost_estimate=cost,
    )(x, w_padded, b_padded, labels_padded)

    total = jnp.sum(loss_rows)
    count = jnp.sum(valid_rows)
    # Guard: if every row is masked torch returns nan; we return 0 instead.
    return total / jnp.maximum(count, jnp.float32(1.0))


def prepare_classifier_params(weight, bias=None, *, tile_c=None):
    """weight: (C, D) torch layout.  Returns (w_padded (D, Cp) bf16,
    b_padded (1, Cp) f32, tile_c).  Done once; not per forward call."""
    C, D = weight.shape
    if tile_c is None:
        # 256 fills a v6e/v7x MXU pass; 128 when the head is tiny (and v5e width).
        tile_c = 128 if C <= 128 else 256
    Cp = _round_up(C, tile_c)
    w_padded = jnp.zeros((D, Cp), jnp.bfloat16).at[:, :C].set(
        weight.astype(jnp.bfloat16).T)
    b_padded = jnp.full((1, Cp), _NEG_BIG, jnp.float32)
    if bias is not None:
        b_padded = b_padded.at[0, :C].set(bias.astype(jnp.float32))
    else:
        b_padded = b_padded.at[0, :C].set(0.0)
    return w_padded, b_padded, tile_c


def _pad_labels(target_labels, n_rows_padded):
    n = target_labels.shape[0]
    return jnp.full((n_rows_padded, 1), -1, jnp.int32).at[:n, 0].set(
        target_labels.astype(jnp.int32))


def masked_cross_entropy(inputs, target_labels, weight, bias=None, *,
                         tile_n=None, tile_c=None):
    """Standalone functional entry point with torch-layout (C, D) weight."""
    N, D = inputs.shape
    w_padded, b_padded, tile_c = prepare_classifier_params(weight, bias,
                                                           tile_c=tile_c)
    if tile_n is None:
        tile_n = _default_tile_n(N, D)
    Np = _round_up(N, tile_n)
    labels_padded = _pad_labels(target_labels, Np)
    return masked_cross_entropy_padded(inputs, labels_padded, w_padded, b_padded,
                                       tile_n=tile_n, tile_c=tile_c)


class Classification:
    """JAX/Pallas port of the PyTorch Classification module (forward pass)."""

    def __init__(self, input_dim, output_dim, dropout=0.0, bias=True, key=None):
        self.input_dim = input_dim
        self.output_dim = output_dim
        self.use_bias = bias
        if key is None:
            key = jax.random.PRNGKey(0)
        # nn.init.xavier_normal_: std = sqrt(2 / (fan_in + fan_out)), gain = 1.
        std = (2.0 / (input_dim + output_dim)) ** 0.5
        self.weight = std * jax.random.normal(
            key, (output_dim, input_dim), jnp.float32)       # torch layout (C, D)
        self.bias = jnp.zeros((output_dim,), jnp.float32) if bias else None
        # Pre-transpose / pad / cast once so the forward pass does no per-call
        # weight re-layout through HBM.
        self._w_padded, self._b_padded, self._tile_c = prepare_classifier_params(
            self.weight, self.bias)

    def __call__(self, inputs, target_labels, *, tile_n=None):
        N, D = inputs.shape
        if tile_n is None:
            tile_n = _default_tile_n(N, D)
        Np = _round_up(N, tile_n)
        labels_padded = _pad_labels(target_labels, Np)
        return masked_cross_entropy_padded(
            inputs, labels_padded, self._w_padded, self._b_padded,
            tile_n=tile_n, tile_c=self._tile_c)

    def get_linear_model(self):
        return self.weight, self.bias


def _reference_loss(inputs, labels, weight, bias):
    # Mirrors the kernel's bf16 operand rounding with f32 accumulation.
    x = inputs.astype(jnp.bfloat16).astype(jnp.float32)
    w = weight.astype(jnp.bfloat16).astype(jnp.float32)
    logits = x @ w.T
    if bias is not None:
        logits = logits + bias
    mask = labels != -1
    lse = jax.nn.logsumexp(logits, axis=-1)
    picked = jnp.take_along_axis(
        logits, jnp.maximum(labels, 0)[:, None].astype(jnp.int32), axis=-1)[:, 0]
    losses = jnp.where(mask, lse - picked, 0.0)
    return jnp.sum(losses) / jnp.maximum(jnp.sum(mask.astype(jnp.float32)), 1.0)


if __name__ == "__main__":
    key = jax.random.PRNGKey(0)
    k_x, k_lab, k_w, k_x2, k_lab2, k_w2 = jax.random.split(key, 6)

    # Case 1: small exact-tile problem (one row tile, one class tile).
    batch, input_dim, output_dim = 16, 32, 8
    inputs = jax.random.normal(k_x, (batch, input_dim), jnp.float32)
    target_labels = jax.random.randint(k_lab, (batch,), 0, output_dim, jnp.int32)
    target_labels = target_labels.at[1].set(-1).at[7].set(-1).at[12].set(-1)

    model = Classification(input_dim, output_dim, bias=True, key=k_w)
    loss = jax.block_until_ready(model(inputs, target_labels))
    ref = _reference_loss(inputs, target_labels, model.weight, model.bias)
    assert loss.shape == ()
    assert bool(jnp.isfinite(loss))
    assert bool(jnp.allclose(loss, ref, rtol=1e-4, atol=1e-4)), (loss, ref)

    # Case 2: ragged batch (row-tail masking) + two class tiles (online LSE path).
    batch2, input_dim2, output_dim2 = 20, 32, 300        # Cp = 512 -> 2 class tiles
    inputs2 = jax.random.normal(k_x2, (batch2, input_dim2), jnp.float32)
    labels2 = jax.random.randint(k_lab2, (batch2,), 0, output_dim2, jnp.int32)
    labels2 = labels2.at[0].set(-1).at[13].set(-1)

    model2 = Classification(input_dim2, output_dim2, bias=True, key=k_w2)
    loss2 = jax.block_until_ready(model2(inputs2, labels2))
    ref2 = _reference_loss(inputs2, labels2, model2.weight, model2.bias)
    assert bool(jnp.isfinite(loss2))
    assert bool(jnp.allclose(loss2, ref2, rtol=1e-4, atol=1e-4)), (loss2, ref2)

    print("KERNEL_OK")
</pallas_src>

<mosaic_0001>
module attributes {stable_mosaic.version = 11 : i64} {
  func.func @_masked_ce_kernel(%arg0: i32, %arg1: i32, %arg2: memref<16x32xbf16, #tpu.memory_space<vmem>>, %arg3: memref<32x128xbf16, #tpu.memory_space<vmem>>, %arg4: memref<1x128xf32, #tpu.memory_space<vmem>>, %arg5: memref<16x1xi32, #tpu.memory_space<vmem>>, %arg6: memref<16x1xf32, #tpu.memory_space<vmem>>, %arg7: memref<16x1xf32, #tpu.memory_space<vmem>>, %arg8: memref<16x1xf32, #tpu.memory_space<vmem>>, %arg9: memref<16x1xf32, #tpu.memory_space<vmem>>, %arg10: memref<16x1xf32, #tpu.memory_space<vmem>>) attributes {dimension_semantics = [#tpu.dimension_semantics<parallel>, #tpu.dimension_semantics<arbitrary>], iteration_bounds = array<i64: 1, 1>, scalar_prefetch = 0 : i64, scratch_operands = 3 : i64, tpu.core_type = #tpu.core_type<tc>, window_params = [{transform_indices = @transform_0, window_bounds = array<i64: 16, 32>}, {transform_indices = @transform_1, window_bounds = array<i64: 32, 128>}, {transform_indices = @transform_2, window_bounds = array<i64: 1, 128>}, {transform_indices = @transform_3, window_bounds = array<i64: 16, 1>}, {transform_indices = @transform_4, window_bounds = array<i64: 16, 1>}, {transform_indices = @transform_5, window_bounds = array<i64: 16, 1>}]} {
    %c0_i32 = arith.constant 0 : i32
    %0 = arith.cmpi eq, %arg1, %c0_i32 : i32
    %1 = arith.extui %0 : i1 to i32
    %c0_i32_0 = arith.constant 0 : i32
    %2 = arith.cmpi ne, %1, %c0_i32_0 : i32
    scf.if %2 {
      %cst_26 = arith.constant 0xFF800000 : f32
      %42 = vector.broadcast %cst_26 : f32 to vector<16x1xf32>
      %c0_27 = arith.constant 0 : index
      %c0_28 = arith.constant 0 : index
      %43 = vector.load %arg8[%c0_27, %c0_28] : memref<16x1xf32, #tpu.memory_space<vmem>>, vector<16x1xf32>
      tpu.vector_store %arg8[%c0_27, %c0_28], %42 {strides = array<i32>} : memref<16x1xf32, #tpu.memory_space<vmem>>, vector<16x1xf32>,
      %cst_29 = arith.constant 0.000000e+00 : f32
      %44 = vector.broadcast %cst_29 : f32 to vector<16x1xf32>
      %c0_30 = arith.constant 0 : index
      %c0_31 = arith.constant 0 : index
      %45 = vector.load %arg9[%c0_30, %c0_31] : memref<16x1xf32, #tpu.memory_space<vmem>>, vector<16x1xf32>
      tpu.vector_store %arg9[%c0_30, %c0_31], %44 {strides = array<i32>} : memref<16x1xf32, #tpu.memory_space<vmem>>, vector<16x1xf32>,
      %cst_32 = arith.constant 0.000000e+00 : f32
      %46 = vector.broadcast %cst_32 : f32 to vector<16x1xf32>
      %c0_33 = arith.constant 0 : index
      %c0_34 = arith.constant 0 : index
      %47 = vector.load %arg10[%c0_33, %c0_34] : memref<16x1xf32, #tpu.memory_space<vmem>>, vector<16x1xf32>
      tpu.vector_store %arg10[%c0_33, %c0_34], %46 {strides = array<i32>} : memref<16x1xf32, #tpu.memory_space<vmem>>, vector<16x1xf32>,
    } else {
    }
    %c0 = arith.constant 0 : index
    %c0_1 = arith.constant 0 : index
    %3 = vector.load %arg2[%c0, %c0_1] : memref<16x32xbf16, #tpu.memory_space<vmem>>, vector<16x32xbf16>
    %c0_2 = arith.constant 0 : index
    %c0_3 = arith.constant 0 : index
    %4 = vector.load %arg3[%c0_2, %c0_3] : memref<32x128xbf16, #tpu.memory_space<vmem>>, vector<32x128xbf16>
    %cst = arith.constant dense<0.000000e+00> : vector<16x128xf32>
    %5 = tpu.matmul %3, %4, %cst {dimension_numbers = #tpu.dot_dimension_numbers<[1], [0], [0], [1], [0, 0, 1, 1], [], []>} : vector<16x32xbf16>, vector<32x128xbf16>, vector<16x128xf32> -> vector<16x128xf32>
    %c0_4 = arith.constant 0 : index
    %c0_5 = arith.constant 0 : index
    %6 = vector.load %arg4[%c0_4, %c0_5] : memref<1x128xf32, #tpu.memory_space<vmem>>, vector<1x128xf32>
    %7 = vector.broadcast %6 : vector<1x128xf32> to vector<16x128xf32>
    %8 = arith.addf %5, %7 : vector<16x128xf32>
    %c0_6 = arith.constant 0 : index
    %c0_7 = arith.constant 0 : index
    %9 = vector.load %arg5[%c0_6, %c0_7] : memref<16x1xi32, #tpu.memory_space<vmem>>, vector<16x1xi32>
    %c0_8 = arith.constant 0 : index
    %c0_9 = arith.constant 0 : index
    %10 = vector.load %arg8[%c0_8, %c0_9] : memref<16x1xf32, #tpu.memory_space<vmem>>, vector<16x1xf32>
    %cst_10 = arith.constant dense<0xFF800000> : vector<16xf32>
    %11 = vector.multi_reduction <maximumf>, %8, %cst_10 [1] : vector<16x128xf32> to vector<16xf32>
    %12 = vector.shape_cast %11 : vector<16xf32> to vector<16x1xf32>
    %13 = arith.maximumf %10, %12 : vector<16x1xf32>
    %14 = arith.subf %10, %13 : vector<16x1xf32>
    %15 = math.exp %14 : vector<16x1xf32>
    %c0_11 = arith.constant 0 : index
    %c0_12 = arith.constant 0 : index
    %16 = vector.load %arg9[%c0_11, %c0_12] : memref<16x1xf32, #tpu.memory_space<vmem>>, vector<16x1xf32>
    %17 = arith.mulf %15, %16 : vector<16x1xf32>
    %18 = vector.broadcast %13 : vector<16x1xf32> to vector<16x128xf32>
    %19 = arith.subf %8, %18 : vector<16x128xf32>
    %20 = math.exp %19 : vector<16x128xf32>
    %cst_13 = arith.constant dense<0.000000e+00> : vector<16xf32>
    %21 = vector.multi_reduction <add>, %20, %cst_13 [1] : vector<16x128xf32> to vector<16xf32>
    %22 = vector.shape_cast %21 : vector<16xf32> to vector<16x1xf32>
    %23 = arith.addf %17, %22 : vector<16x1xf32>
    %c0_14 = arith.constant 0 : index
    %c0_15 = arith.constant 0 : index
    %24 = vector.load %arg9[%c0_14, %c0_15] : memref<16x1xf32, #tpu.memory_space<vmem>>, vector<16x1xf32>
    tpu.vector_store %arg9[%c0_14, %c0_15], %23 {strides = array<i32>} : memref<16x1xf32, #tpu.memory_space<vmem>>, vector<16x1xf32>,
    %c0_16 = arith.constant 0 : index
    %c0_17 = arith.constant 0 : index
    %25 = vector.load %arg8[%c0_16, %c0_17] : memref<16x1xf32, #tpu.memory_space<vmem>>, vector<16x1xf32>
    tpu.vector_store %arg8[%c0_16, %c0_17], %13 {strides = array<i32>} : memref<16x1xf32, #tpu.memory_space<vmem>>, vector<16x1xf32>,
    %26 = tpu.iota {dimensions = array<i32: 1>} : vector<16x128xi32>
    %c128_i32 = arith.constant 128 : i32
    %27 = arith.muli %arg1, %c128_i32 : i32
    %28 = vector.broadcast %27 : i32 to vector<16x1xi32>
    %29 = arith.subi %9, %28 : vector<16x1xi32>
    %30 = vector.broadcast %29 : vector<16x1xi32> to vector<16x128xi32>
    %31 = arith.cmpi eq, %26, %30 : vector<16x128xi32>
    %c0_18 = arith.constant 0 : index
    %c0_19 = arith.constant 0 : index
    %32 = vector.load %arg10[%c0_18, %c0_19] : memref<16x1xf32, #tpu.memory_space<vmem>>, vector<16x1xf32>
    %cst_20 = arith.constant 0.000000e+00 : f32
    %33 = vector.broadcast %cst_20 : f32 to vector<16x128xf32>
    %34 = arith.select %31, %8, %33 : vector<16x128xi1>, vector<16x128xf32>
    %cst_21 = arith.constant dense<0.000000e+00> : vector<16xf32>
    %35 = vector.multi_reduction <add>, %34, %cst_21 [1] : vector<16x128xf32> to vector<16xf32>
    %36 = vector.shape_cast %35 : vector<16xf32> to vector<16x1xf32>
    %37 = arith.addf %32, %36 : vector<16x1xf32>
    %c0_22 = arith.constant 0 : index
    %c0_23 = arith.constant 0 : index
    %38 = vector.load %arg10[%c0_22, %c0_23] : memref<16x1xf32, #tpu.memory_space<vmem>>, vector<16x1xf32>
    tpu.vector_store %arg10[%c0_22, %c0_23], %37 {strides = array<i32>} : memref<16x1xf32, #tpu.memory_space<vmem>>, vector<16x1xf32>,
    %c0_i32_24 = arith.constant 0 : i32
    %39 = arith.cmpi eq, %arg1, %c0_i32_24 : i32
    %40 = arith.extui %39 : i1 to i32
    %c0_i32_25 = arith.constant 0 : i32
    %41 = arith.cmpi ne, %40, %c0_i32_25 : i32
    scf.if %41 {
      %c-1_i32 = arith.constant -1 : i32
      %42 = vector.broadcast %c-1_i32 : i32 to vector<16x1xi32>
      %43 = arith.cmpi ne, %9, %42 : vector<16x1xi32>
      %c0_26 = arith.constant 0 : index
      %c0_27 = arith.constant 0 : index
      %44 = vector.load %arg8[%c0_26, %c0_27] : memref<16x1xf32, #tpu.memory_space<vmem>>, vector<16x1xf32>
      %c0_28 = arith.constant 0 : index
      %c0_29 = arith.constant 0 : index
      %45 = vector.load %arg9[%c0_28, %c0_29] : memref<16x1xf32, #tpu.memory_space<vmem>>, vector<16x1xf32>
      %46 = math.log %45 : vector<16x1xf32>
      %47 = arith.addf %44, %46 : vector<16x1xf32>
      %c0_30 = arith.constant 0 : index
      %c0_31 = arith.constant 0 : index
      %48 = vector.load %arg10[%c0_30, %c0_31] : memref<16x1xf32, #tpu.memory_space<vmem>>, vector<16x1xf32>
      %49 = arith.subf %47, %48 : vector<16x1xf32>
      %cst_32 = arith.constant 0.000000e+00 : f32
      %50 = vector.broadcast %cst_32 : f32 to vector<16x1xf32>
      %51 = arith.select %43, %49, %50 : vector<16x1xi1>, vector<16x1xf32>
      %c0_33 = arith.constant 0 : index
      %c0_34 = arith.constant 0 : index
      %52 = vector.load %arg6[%c0_33, %c0_34] : memref<16x1xf32, #tpu.memory_space<vmem>>, vector<16x1xf32>
      tpu.vector_store %arg6[%c0_33, %c0_34], %51 {strides = array<i32>} : memref<16x1xf32, #tpu.memory_space<vmem>>, vector<16x1xf32>,
      %53 = arith.extui %43 : vector<16x1xi1> to vector<16x1xi32>
      %54 = arith.sitofp %53 : vector<16x1xi32> to vector<16x1xf32>
      %c0_35 = arith.constant 0 : index
      %c0_36 = arith.constant 0 : index
      %55 = vector.load %arg7[%c0_35, %c0_36] : memref<16x1xf32, #tpu.memory_space<vmem>>, vector<16x1xf32>
      tpu.vector_store %arg7[%c0_35, %c0_36], %54 {strides = array<i32>} : memref<16x1xf32, #tpu.memory_space<vmem>>, vector<16x1xf32>,
    } else {
    }
    return
  }
  func.func @transform_0(%arg0: i32, %arg1: i32) -> (i32, i32) {
    %c0_i32 = arith.constant 0 : i32
    %c0_i32_0 = arith.constant 0 : i32
    return %arg0, %c0_i32 : i32, i32
  }
  func.func @transform_1(%arg0: i32, %arg1: i32) -> (i32, i32) {
    %c0_i32 = arith.constant 0 : i32
    %c0_i32_0 = arith.constant 0 : i32
    return %c0_i32, %arg1 : i32, i32
  }
  func.func @transform_2(%arg0: i32, %arg1: i32) -> (i32, i32) {
    %c0_i32 = arith.constant 0 : i32
    %c0_i32_0 = arith.constant 0 : i32
    return %c0_i32, %arg1 : i32, i32
  }
  func.func @transform_3(%arg0: i32, %arg1: i32) -> (i32, i32) {
    %c0_i32 = arith.constant 0 : i32
    %c0_i32_0 = arith.constant 0 : i32
    return %arg0, %c0_i32 : i32, i32
  }
  func.func @transform_4(%arg0: i32, %arg1: i32) -> (i32, i32) {
    %c0_i32 = arith.constant 0 : i32
    %c0_i32_0 = arith.constant 0 : i32
    return %arg0, %c0_i32 : i32, i32
  }
  func.func @transform_5(%arg0: i32, %arg1: i32) -> (i32, i32) {
    %c0_i32 = arith.constant 0 : i32
    %c0_i32_0 = arith.constant 0 : i32
    return %arg0, %c0_i32 : i32, i32
  }
}

</mosaic_0001>

<bundles_post_ra>
// kernel: tpu_custom_call.1
= control target key start
LH: loop header
LB: loop body
LE: loop exit
PB: predicated region body
PF: predicated region fallthrough
CT: control target
= control target key end

     0   :  { %11 = vsyncpa [#allocation6], 0  ;;  %s269_s21 = smov [#allocation5]   ;;  %s270_s23 = smov 64   ;;  %s367_s0 = inlined_call_operand.hbm [shape: bf16[16,32], index: 0, kind: input, shape index: {}]   ;;  %s368_s1 = inlined_call_operand.vmem [shape: bf16[32,128], index: 1, kind: input, shape index: {}]   ;;  %s369_s2 = inlined_call_operand.vmem [shape: f32[1,128], index: 2, kind: input, shape index: {}]   ;;  %s370_s3 = inlined_call_operand.vmem [shape: s32[16,1], index: 3, kind: input, shape index: {}]   ;;  %s371_s4 = inlined_call_operand.vmem [shape: f32[16,1], index: 4, kind: output, shape index: {0}]   ;;  %s372_s5 = inlined_call_operand.vmem [shape: f32[16,1], index: 5, kind: output, shape index: {1}]  }
   0x1   :  { %s16_s20 = sshll.u32 %s367_s0, 4  ;;  %s18_s22 = sshll.u32 %s269_s21, 4  ;;  %s17_s20 = int_to_ptr.hbm [resolvable:$true] %s16_s20  ;;  %s19_s22 = int_to_ptr.vmem [resolvable:$true] %s18_s22 }
   0x2   :  { %s271_s24 = smov 4  }
   0x3   :  { %24 = dma.hbm_to_vmem [thread:$0]  %s17_s20, 128, %s19_s22, [#allocation6], %s270_s23, %s270_s23, %s271_s24  }
   0x4   :  { %267 = dma.done.wait [#allocation6], 128  }
   0x5   :  { %268 = vsyncadd [#allocation6], 4294967168  ;;  %vm40_vm0 = vcmask 7168   ;;  %v272_v0 = vmov 0   ;;  %v273_v1 = vmov 0.0   ;;  %v220_v2 = vld [vmem:[%s368_s1 + $0x8] sm:$0xff]  ;;  %v139_v10 = vlaneseq }
   0x6   :  { %228 = vset.pattern.permute.xlu2 %v272_v0  ;;  %43 = vst.msk [vmem:[#allocation3] sm:$0xff] %vm40_vm0, %v273_v1  ;;  %227 = vset.pattern.permute.xlu1 %v272_v0  ;;  %v318_v3 = vld [vmem:[%s370_s3] sm:$0xff]  ;;  %v323_v4 = vld [vmem:[%s370_s3 + $0x8] sm:$0xff]  ;;  %v218_v8 = vld [vmem:[#allocation5] sm:$0xff]  ;;  %vm74_vm3 = vcmask 261120   ;;  %v274_v9 = vmov -inf  }
   0x7   :  { %44 = vst.msk [vmem:[#allocation3 + $0x8] sm:$0xff] %vm40_vm0, %v273_v1  ;;  %229 = vset.pattern.permute.xlu0 %v272_v0  ;;  %84 = vmatpush.bf16.msra.mxu0 %v220_v2  ;;  %v219_v5 = vld [vmem:[%s368_s1] sm:$0xff]  ;;  %vm168_vm1 = vcmp.ne.s32.totalorder %v318_v3, 4294967295  ;;  %vm169_vm2 = vcmp.ne.s32.totalorder %v323_v4, 4294967295  ;;  %v140_v11 = vand.u32 127, %v139_v10 }
   0x8   :  { %45 = vst.msk [vmem:[#allocation4] sm:$0xff] %vm40_vm0, %v273_v1  ;;  %146 = vperm.xlu2 %228, %v318_v3   ;;  %v216_v6 = vsel %vm168_vm1, 1.0, %v273_v1  ;;  %v217_v7 = vsel %vm169_vm2, 1.0, %v273_v1  ;;  %v230_v12 = vld [vmem:[%s369_s2] ss:$0 sm:$0xff] }
   0x9   :  { %46 = vst.msk [vmem:[#allocation4 + $0x8] sm:$0xff] %vm40_vm0, %v273_v1 }
   0xa   :  { %192 = vst.msk [vmem:[%s372_s5] sm:$0xff] %vm40_vm0, %v216_v6 }
   0xb   :  { %193 = vst.msk [vmem:[%s372_s5 + $0x8] sm:$0xff] %vm40_vm0, %v217_v7  ;;  %85 = vmatpush.bf16.msra.mxu0 %v219_v5 }
   0xc   :  { %41 = vst.msk [vmem:[#allocation2] sm:$0xff] %vm40_vm0, %v274_v9 }
   0xd   :  { %42 = vst.msk [vmem:[#allocation2 + $0x8] sm:$0xff] %vm40_vm0, %v274_v9  ;;  %v108_v43 = vld [vmem:[#allocation3] sm:$0xff] }
   0xe   :  { %215 = vmatmul.msk.bf16.vlgmr.msra.gmra.mxu0 %vm74_vm3, %v218_v8  ;;  %v109_v48 = vld [vmem:[#allocation3 + $0x8] sm:$0xff] }
   0xf   :  { %v153_v21 = vld [vmem:[#allocation4] sm:$0xff] }
  0x10   :  { %149 = vperm.xlu2 %228, %v323_v4   ;;  %v154_v49 = vld [vmem:[#allocation4 + $0x8] sm:$0xff] }
  0x13   :  { %v94_v20 = vld [vmem:[#allocation2] sm:$0xff] }
  0x14   :  { %v95_v27 = vld [vmem:[#allocation2 + $0x8] sm:$0xff] }
  0x62   :  { %v147_v13 = vpop.permute.xlu2 %146 }
  0x63   :  { %vm151_vm4 = vcmp.eq.s32.totalorder %v140_v11, %v147_v13 }
  0x6a   :  { %v150_v19 = vpop.permute.xlu2 %149 }
  0x6b   :  { %vm152_vm5 = vcmp.eq.s32.totalorder %v140_v11, %v150_v19 }
  0x8b   :  { %v87_v14 = vpop.f32.mrf.mxu0 }
  0x8c   :  { %v88_v15 = vadd.f32 %v230_v12, %v87_v14 }
  0x8e   :  { %96 = vmax.xlane.f32.xlu0 %v88_v15  ;;  %v155_v16 = vsel %vm151_vm4, %v88_v15, 0.0 }
  0x8f   :  { %157 = vadd.xlane.f32.xlu2 %v155_v16 }
  0x93   :  { %v89_v17 = vpop.f32.mrf.mxu0 }
  0x94   :  { %v90_v18 = vadd.f32 %v230_v12, %v89_v17 }
  0x96   :  { %98 = vmax.xlane.f32.xlu0 %v90_v18  ;;  %v156_v39 = vsel %vm152_vm5, %v90_v18, 0.0 }
 0x101   :  { %v97_v22 = vpop.xlane.xlu0 %96 }
 0x102   :  { %v100_v23 = vmax.f32 %v94_v20, %v97_v22  ;;  %v158_v24 = vpop.xlane.xlu2 %157 }
 0x103   :  { %v161_v25 = vadd.f32 %v158_v24, %v153_v21 }
 0x104   :  { %v102_v26 = vsub.f32 %v94_v20, %v100_v23  ;;  %137 = vst.msk [vmem:[#allocation2] sm:$0xff] %vm40_vm0, %v100_v23  ;;  %114 = vperm.xlu1 %227, %v100_v23  }
 0x105   :  { %163 = vst.msk [vmem:[#allocation4] sm:$0xff] %vm40_vm0, %v161_v25 }
 0x106   :  { %v104_v40 = vmul.f32 1.442695, %v102_v26 }
 0x109   :  { %v99_v28 = vpop.xlane.xlu0 %98 }
 0x10a   :  { %v101_v29 = vmax.f32 %v95_v27, %v99_v28 }
 0x10b   :  { %v170_v58 = vld [vmem:[#allocation2] sm:$0xff] }
 0x10c   :  { %v103_v30 = vsub.f32 %v95_v27, %v101_v29  ;;  %138 = vst.msk [vmem:[#allocation2 + $0x8] sm:$0xff] %vm40_vm0, %v101_v29  ;;  %119 = vperm.xlu1 %227, %v101_v29   ;;  %v180_v61 = vld [vmem:[#allocation4] sm:$0xff] }
 0x10e   :  { %v106_v41 = vmul.f32 1.442695, %v103_v30 }
 0x113   :  { %v171_v2 = vld [vmem:[#allocation2 + $0x8] sm:$0xff] }
 0x176   :  { %v115_v31 = vpop.permute.xlu1 %114 }
 0x177   :  { %v122_v32 = vsub.f32 %v88_v15, %v115_v31 }
 0x179   :  { %v124_v33 = vmul.f32 1.442695, %v122_v32 }
 0x17b   :  { %231 = vpow2.f32 %v124_v33 }
 0x17e   :  { %v120_v34 = vpop.permute.xlu1 %119 }
 0x17f   :  { %v123_v35 = vsub.f32 %v90_v18, %v120_v34 }
 0x181   :  { %v232_v36 = vpop.eup %231  ;;  %v126_v37 = vmul.f32 1.442695, %v123_v35 }
 0x182   :  { %128 = vadd.xlane.f32.xlu0 %v232_v36 }
 0x183   :  { %233 = vpow2.f32 %v126_v37 }
 0x184   :  { %235 = vpow2.f32 %v104_v40 }
 0x185   :  { %237 = vpow2.f32 %v106_v41 }
 0x189   :  { %v234_v38 = vpop.eup %233 }
 0x18a   :  { %159 = vadd.xlane.f32.xlu0 %v156_v39  ;;  %130 = vadd.xlane.f32.xlu1 %v234_v38  ;;  %v236_v42 = vpop.eup %235 }
 0x18b   :  { %v110_v44 = vmul.f32 %v236_v42, %v108_v43  ;;  %v238_v47 = vpop.eup %237 }
 0x18c   :  { %v111_v50 = vmul.f32 %v238_v47, %v109_v48 }
 0x1f5   :  { %v129_v45 = vpop.xlane.xlu0 %128 }
 0x1f6   :  { %v132_v46 = vadd.f32 %v129_v45, %v110_v44 }
 0x1f8   :  { %135 = vst.msk [vmem:[#allocation3] sm:$0xff] %vm40_vm0, %v132_v46 }
 0x1fd   :  { %v160_v51 = vpop.xlane.xlu0 %159  ;;  %v131_v52 = vpop.xlane.xlu1 %130 }
 0x1fe   :  { %v162_v53 = vadd.f32 %v160_v51, %v154_v49  ;;  %v133_v54 = vadd.f32 %v131_v52, %v111_v50 }
 0x1ff   :  { %v172_v55 = vld [vmem:[#allocation3] sm:$0xff] }
 0x200   :  { %239 = vlog2.f32 %v172_v55  ;;  %164 = vst.msk [vmem:[#allocation4 + $0x8] sm:$0xff] %vm40_vm0, %v162_v53 }
 0x201   :  { %136 = vst.msk [vmem:[#allocation3 + $0x8] sm:$0xff] %vm40_vm0, %v133_v54 }
 0x206   :  { %v240_v56 = vpop.eup %239 }
 0x207   :  { %v175_v57 = vmul.f32 0.6931472, %v240_v56  ;;  %v181_v6 = vld [vmem:[#allocation4 + $0x8] sm:$0xff] }
 0x208   :  { %v173_v59 = vld [vmem:[#allocation3 + $0x8] sm:$0xff] }
 0x209   :  { %v178_v60 = vadd.f32 %v175_v57, %v170_v58  ;;  %241 = vlog2.f32 %v173_v59 }
 0x20b   :  { %v182_v62 = vsub.f32 %v178_v60, %v180_v61 }
 0x20d   :  { %v184_v63 = vsel %vm168_vm1, %v182_v62, 0.0 }
 0x20e   :  { %186 = vst.msk [vmem:[%s371_s4] sm:$0xff] %vm40_vm0, %v184_v63 }
 0x20f   :  { %v242_v0 = vpop.eup %241 }
 0x210   :  { %v177_v1 = vmul.f32 0.6931472, %v242_v0 }
 0x212   :  { %v179_v5 = vadd.f32 %v177_v1, %v171_v2 }
 0x214   :  { %v183_v7 = vsub.f32 %v179_v5, %v181_v6 }
 0x216   :  { %v185_v8 = vsel %vm169_vm2, %v183_v7, 0.0 }
 0x217   :  { %187 = vst.msk [vmem:[%s371_s4 + $0x8] sm:$0xff] %vm40_vm0, %v185_v8 }
 0x218   :  { %202 = vsyncpa [#allocation6], 1 }

</bundles_post_ra>
